<compile_context>
chip_gen: v7x
topology: tpu7x:2x2x1
jax: 0.10.0
libtpu: 0.0.40
codegen_flags: <defaults>
</compile_context>

<pallas_src>
import functools
import math

import jax
import jax.numpy as jnp
from jax.experimental import pallas as pl
from jax.experimental.pallas import tpu as pltpu


def memory_bank_kernel(x_ref, k2_ref, b2_ref, mem_ref, rw_ref, out_ref, *,
                       approx_recip):
    """Grid = (parallel slice, row tile). Output block resident across tiles."""
    t = pl.program_id(1)

    @pl.when(t == 0)
    def _init():
        out_ref[...] = jnp.zeros_like(out_ref)

    # scores = x @ K2 + b2   -- the only large MXU op per tile (f32 accumulation)
    scores = jnp.dot(x_ref[...], k2_ref[...],
                     preferred_element_type=jnp.float32)          # (R_T, Mp)
    scores = scores + b2_ref[...]                                 # (1, Mp) bcast

    # numerically-stable softmax over the memory axis (f32 math)
    m = jnp.max(scores, axis=-1, keepdims=True)
    e = jnp.exp(scores - m)
    denom = jnp.sum(e, axis=-1, keepdims=True)                    # (R_T, 1)
    # exact reciprocal on the f32 path; approx EUP reciprocal only for bf16
    weights = e * pl.reciprocal(denom, approx=approx_recip)       # (R_T, Mp)

    # sequence mean folded BEFORE the memory read: rw@(W@mem) == (rw@W)@mem.
    # rw carries 1/S for real rows and 0 for padded rows, so padding is free.
    w_mean = jnp.dot(rw_ref[...], weights,
                     preferred_element_type=jnp.float32)          # (B, Mp)
    partial = jnp.dot(w_mean.astype(mem_ref.dtype), mem_ref[...],
                      preferred_element_type=jnp.float32)         # (B, Hp)
    out_ref[...] += partial


def _round_up(n, m):
    return ((n + m - 1) // m) * m


def neural_memory_bank_forward(x, memory, proj_w, proj_b, *,
                               compute_dtype=None, row_tile=512):
    """x: (B, S, H), memory: (M, H), proj_w: (H, H), proj_b: (H,) -> (B, H) f32."""
    B, S, H = x.shape
    M = memory.shape[0]
    if compute_dtype is None:
        compute_dtype = x.dtype
    compute_dtype = jnp.dtype(compute_dtype)
    isz = compute_dtype.itemsize
    approx_recip = isz < 4          # approx recip only when bf16 tolerances apply
    f32 = jnp.float32

    # ---- grid-invariant precompute (plain XLA, runs once) --------------------
    inv_scale = 1.0 / math.sqrt(H)
    w_t = proj_w.astype(f32).T                                    # (H_in, H_out)
    pkeys_s = (memory.astype(f32) @ w_t + proj_b.astype(f32)) * inv_scale  # (M, H)
    k2 = w_t @ pkeys_s.T                                          # (H, M)
    b2 = proj_b.astype(f32) @ pkeys_s.T                           # (M,)

    # ---- lane-dense padding ---------------------------------------------------
    Hp = _round_up(H, 128)
    Mp = _round_up(M, 128)

    # ---- flattened-row tiling (packs batch & seq rows to fill the MXU) --------
    R = B * S

    # Per-generation VMEM budget (v5e/v6e: 128 MiB, v7x: 64 MiB per core).
    try:
        phys_vmem = int(getattr(pltpu.get_tpu_info(), "vmem_capacity_bytes"))
    except Exception:
        phys_vmem = 64 * 2 ** 20    # conservative fallback: v7x per-core VMEM
    budget = int(0.85 * phys_vmem)

    def footprint(rt):
        return (2 * rt * Hp * isz            # x stream (double-buffered)
                + 2 * B * rt * 4             # row-weight stream (double-buffered)
                + Hp * Mp * isz              # K2 (single-buffered, constant)
                + 8 * Mp * 4                 # b2
                + Mp * Hp * isz              # memory (single-buffered, constant)
                + 2 * B * Hp * 4             # output accumulator
                + 4 * rt * Mp * 4)           # f32 scores/exp/weights intermediates

    r_tile = max(256, _round_up(row_tile, 256))
    while r_tile > 256 and footprint(r_tile) > budget:
        r_tile //= 2

    if R <= r_tile:
        r_tile = _round_up(R, 8)             # single full-extent row tile
        num_tiles = 1
    else:
        num_tiles = -(-R // r_tile)          # r_tile stays a multiple of 128 here

    # Split row tiles across a real "parallel" axis so a second TensorCore
    # (v7x) has work even when batch == 1; per-slice partials summed outside.
    P = 2 if num_tiles >= 2 else 1
    t_per_p = -(-num_tiles // P)
    R_pad = P * t_per_p * r_tile

    # ---- input layout plumbing -------------------------------------------------
    x2 = x.reshape(R, H)                      # free reshape of a contiguous array
    if x2.dtype != compute_dtype:
        x2 = x2.astype(compute_dtype)
    if (R_pad != R) or (Hp != H):
        # zero row/column padding is exactly neutral (masked by rw / sliced off)
        x2 = jnp.pad(x2, ((0, R_pad - R), (0, Hp - H)))

    k2_p = jnp.pad(k2, ((0, Hp - H), (0, Mp - M))).astype(compute_dtype)
    if Mp != M:
        # padded memory slots get a huge negative bias -> exactly zero softmax weight
        b2 = jnp.concatenate([b2, jnp.full((Mp - M,), -1e30, f32)])
    b2_p = b2.reshape(1, Mp)
    mem_p = jnp.pad(memory.astype(f32),
                    ((0, Mp - M), (0, Hp - H))).astype(compute_dtype)

    # Row weights: rw[b, r] = 1/S if flattened row r belongs to batch b else 0.
    row_ids = jnp.arange(R_pad)
    owner = row_ids // S
    valid = row_ids < R
    rw = ((owner[None, :] == jnp.arange(B)[:, None]) & valid[None, :])
    rw = rw.astype(f32) * (1.0 / S)                              # (B, R_pad)

    # vmem limit: comfortable headroom, never below the real footprint,
    # never above the per-generation budget / physical capacity.
    need = footprint(r_tile)
    vmem_limit = max(int(1.5 * need), 32 * 2 ** 20)
    vmem_limit = min(vmem_limit, budget)
    vmem_limit = max(vmem_limit, need)
    vmem_limit = int(min(vmem_limit, phys_vmem))

    def _const_spec(shape):
        # Grid-invariant blocks: single-buffer them (constant index_map means
        # double-buffering gives zero pipelining benefit and doubles VMEM).
        imap = lambda p, t: (0, 0)
        try:
            return pl.BlockSpec(shape, imap, pipeline_mode=pl.Buffered(1))
        except Exception:
            return pl.BlockSpec(shape, imap)

    row_map = lambda p, t: (p * t_per_p + t, 0)
    rw_map = lambda p, t: (0, p * t_per_p + t)

    kernel = functools.partial(memory_bank_kernel, approx_recip=approx_recip)

    out = pl.pallas_call(
        kernel,
        out_shape=jax.ShapeDtypeStruct((P, B, Hp), jnp.float32),
        grid_spec=pltpu.PrefetchScalarGridSpec(
            num_scalar_prefetch=0,
            grid=(P, t_per_p),
            in_specs=[
                pl.BlockSpec((r_tile, Hp), row_map),    # x rows (streamed)
                _const_spec((Hp, Mp)),                  # K2 = W^T @ pkeys_s^T
                _const_spec((1, Mp)),                   # b2 = b @ pkeys_s^T
                _const_spec((Mp, Hp)),                  # memory
                pl.BlockSpec((B, r_tile), rw_map),      # row weights (streamed)
            ],
            out_specs=pl.BlockSpec((None, B, Hp), lambda p, t: (p, 0, 0)),
        ),
        compiler_params=pltpu.CompilerParams(
            dimension_semantics=("parallel", "arbitrary"),
            vmem_limit_bytes=vmem_limit),
    )(x2, k2_p, b2_p, mem_p, rw)

    context = out.sum(axis=0)                  # combine per-core partial sums
    return context[:, :H]


def reference_forward(x, memory, proj_w, proj_b):
    """Pure-JAX reference matching the PyTorch forward."""
    H = x.shape[-1]
    pkeys = memory @ proj_w.T + proj_b
    q = x @ proj_w.T + proj_b
    scores = jnp.einsum("bsh,mh->bsm", q, pkeys) / jnp.sqrt(jnp.float32(H))
    weights = jax.nn.softmax(scores, axis=-1)
    read = jnp.einsum("bsm,mh->bsh", weights, memory)
    return read.mean(axis=1)


if __name__ == "__main__":
    B, S, H, M = 2, 8, 32, 128   # batch, seq, hidden_size, memory_size

    key = jax.random.PRNGKey(0)
    k_mem, k_w, k_b, k_x = jax.random.split(key, 4)

    # Deterministic parameter init mirroring the PyTorch module's __init__:
    #   memory: xavier_uniform_  -> U(-sqrt(6/(M+H)), sqrt(6/(M+H)))
    #   proj:   nn.Linear default -> U(-1/sqrt(H), 1/sqrt(H)) for weight & bias
    bound_mem = math.sqrt(6.0 / (M + H))
    memory = jax.random.uniform(k_mem, (M, H), jnp.float32, -bound_mem, bound_mem)
    bound_lin = 1.0 / math.sqrt(H)
    proj_w = jax.random.uniform(k_w, (H, H), jnp.float32, -bound_lin, bound_lin)
    proj_b = jax.random.uniform(k_b, (H,), jnp.float32, -bound_lin, bound_lin)

    x = jax.random.normal(k_x, (B, S, H), jnp.float32)

    ref = reference_forward(x, memory, proj_w, proj_b)

    # f32 path (tight tolerance; exact softmax reciprocal)
    out = neural_memory_bank_forward(x, memory, proj_w, proj_b)
    out = jax.block_until_ready(out)
    assert out.shape == (B, H)
    assert jnp.allclose(out, ref, atol=2e-4, rtol=2e-4), "f32 mismatch vs reference"

    # bf16 MXU path (bf16 operands, f32 accumulation / f32 softmax)
    out_bf16 = neural_memory_bank_forward(x, memory, proj_w, proj_b,
                                          compute_dtype=jnp.bfloat16)
    out_bf16 = jax.block_until_ready(out_bf16)
    assert jnp.allclose(out_bf16, ref, atol=1e-2, rtol=1e-2), "bf16 mismatch vs reference"

    # Multi-tile path: exercises row tiling, the P=2 parallel split and the
    # pl.when-gated accumulation across row tiles.
    B2, S2 = 1, 1200
    x2 = jax.random.normal(jax.random.PRNGKey(1), (B2, S2, H), jnp.float32)
    ref2 = reference_forward(x2, memory, proj_w, proj_b)
    out2 = neural_memory_bank_forward(x2, memory, proj_w, proj_b)
    out2 = jax.block_until_ready(out2)
    assert out2.shape == (B2, H)
    assert jnp.allclose(out2, ref2, atol=2e-4, rtol=2e-4), "tiled f32 mismatch"

    print("KERNEL_OK")
</pallas_src>

<mosaic_0001>
module attributes {stable_mosaic.version = 11 : i64} {
  func.func @memory_bank_kernel(%arg0: i32, %arg1: i32, %arg2: memref<16x128xf32, #tpu.memory_space<vmem>>, %arg3: memref<128x128xf32, #tpu.memory_space<vmem>>, %arg4: memref<1x128xf32, #tpu.memory_space<vmem>>, %arg5: memref<128x128xf32, #tpu.memory_space<vmem>>, %arg6: memref<2x16xf32, #tpu.memory_space<vmem>>, %arg7: memref<1x2x128xf32, #tpu.memory_space<vmem>>) attributes {dimension_semantics = [#tpu.dimension_semantics<parallel>, #tpu.dimension_semantics<arbitrary>], iteration_bounds = array<i64: 1, 1>, scalar_prefetch = 0 : i64, scratch_operands = 0 : i64, tpu.core_type = #tpu.core_type<tc>, window_params = [{transform_indices = @transform_0, window_bounds = array<i64: 16, 128>}, {pipeline_mode = #tpu.pipeline_mode<synchronous>, transform_indices = @transform_1, window_bounds = array<i64: 128, 128>}, {pipeline_mode = #tpu.pipeline_mode<synchronous>, transform_indices = @transform_2, window_bounds = array<i64: 1, 128>}, {pipeline_mode = #tpu.pipeline_mode<synchronous>, transform_indices = @transform_3, window_bounds = array<i64: 128, 128>}, {transform_indices = @transform_4, window_bounds = array<i64: 2, 16>}, {transform_indices = @transform_5, window_bounds = array<i64: 1, 2, 128>}]} {
    %c0_i32 = arith.constant 0 : i32
    %0 = arith.cmpi eq, %arg1, %c0_i32 : i32
    %1 = arith.extui %0 : i1 to i32
    %c0_i32_0 = arith.constant 0 : i32
    %2 = arith.cmpi ne, %1, %c0_i32_0 : i32
    scf.if %2 {
      %cst_20 = arith.constant 0.000000e+00 : f32
      %29 = vector.broadcast %cst_20 : f32 to vector<2x128xf32>
      %c0_21 = arith.constant 0 : index
      %c0_22 = arith.constant 0 : index
      %c0_23 = arith.constant 0 : index
      %30 = vector.load %arg7[%c0_21, %c0_22, %c0_23] : memref<1x2x128xf32, #tpu.memory_space<vmem>>, vector<1x2x128xf32>
      %31 = vector.shape_cast %30 : vector<1x2x128xf32> to vector<2x128xf32>
      %32 = vector.shape_cast %29 : vector<2x128xf32> to vector<1x2x128xf32>
      tpu.vector_store %arg7[%c0_21, %c0_22, %c0_23], %32 {strides = array<i32>} : memref<1x2x128xf32, #tpu.memory_space<vmem>>, vector<1x2x128xf32>,
    } else {
    }
    %c0 = arith.constant 0 : index
    %c0_1 = arith.constant 0 : index
    %3 = vector.load %arg2[%c0, %c0_1] : memref<16x128xf32, #tpu.memory_space<vmem>>, vector<16x128xf32>
    %c0_2 = arith.constant 0 : index
    %c0_3 = arith.constant 0 : index
    %4 = vector.load %arg3[%c0_2, %c0_3] : memref<128x128xf32, #tpu.memory_space<vmem>>, vector<128x128xf32>
    %cst = arith.constant dense<0.000000e+00> : vector<16x128xf32>
    %5 = tpu.matmul %3, %4, %cst {dimension_numbers = #tpu.dot_dimension_numbers<[1], [0], [0], [1], [0, 0, 1, 1], [], []>} : vector<16x128xf32>, vector<128x128xf32>, vector<16x128xf32> -> vector<16x128xf32>
    %c0_4 = arith.constant 0 : index
    %c0_5 = arith.constant 0 : index
    %6 = vector.load %arg4[%c0_4, %c0_5] : memref<1x128xf32, #tpu.memory_space<vmem>>, vector<1x128xf32>
    %7 = vector.broadcast %6 : vector<1x128xf32> to vector<16x128xf32>
    %8 = arith.addf %5, %7 : vector<16x128xf32>
    %cst_6 = arith.constant dense<0xFF800000> : vector<16xf32>
    %9 = vector.multi_reduction <maximumf>, %8, %cst_6 [1] : vector<16x128xf32> to vector<16xf32>
    %10 = vector.shape_cast %9 : vector<16xf32> to vector<16x1xf32>
    %11 = vector.broadcast %10 : vector<16x1xf32> to vector<16x128xf32>
    %12 = arith.subf %8, %11 : vector<16x128xf32>
    %13 = math.exp %12 : vector<16x128xf32>
    %cst_7 = arith.constant dense<0.000000e+00> : vector<16xf32>
    %14 = vector.multi_reduction <add>, %13, %cst_7 [1] : vector<16x128xf32> to vector<16xf32>
    %15 = vector.shape_cast %14 : vector<16xf32> to vector<16x1xf32>
    %16 = tpu.reciprocal %15 : vector<16x1xf32> -> vector<16x1xf32>
    %17 = vector.broadcast %16 : vector<16x1xf32> to vector<16x128xf32>
    %18 = arith.mulf %13, %17 : vector<16x128xf32>
    %c0_8 = arith.constant 0 : index
    %c0_9 = arith.constant 0 : index
    %19 = vector.load %arg6[%c0_8, %c0_9] : memref<2x16xf32, #tpu.memory_space<vmem>>, vector<2x16xf32>
    %cst_10 = arith.constant dense<0.000000e+00> : vector<2x128xf32>
    %20 = tpu.matmul %19, %18, %cst_10 {dimension_numbers = #tpu.dot_dimension_numbers<[1], [0], [0], [1], [0, 0, 1, 1], [], []>} : vector<2x16xf32>, vector<16x128xf32>, vector<2x128xf32> -> vector<2x128xf32>
    %c0_11 = arith.constant 0 : index
    %c0_12 = arith.constant 0 : index
    %21 = vector.load %arg5[%c0_11, %c0_12] : memref<128x128xf32, #tpu.memory_space<vmem>>, vector<128x128xf32>
    %cst_13 = arith.constant dense<0.000000e+00> : vector<2x128xf32>
    %22 = tpu.matmul %20, %21, %cst_13 {dimension_numbers = #tpu.dot_dimension_numbers<[1], [0], [0], [1], [0, 0, 1, 1], [], []>} : vector<2x128xf32>, vector<128x128xf32>, vector<2x128xf32> -> vector<2x128xf32>
    %c0_14 = arith.constant 0 : index
    %c0_15 = arith.constant 0 : index
    %c0_16 = arith.constant 0 : index
    %23 = vector.load %arg7[%c0_14, %c0_15, %c0_16] : memref<1x2x128xf32, #tpu.memory_space<vmem>>, vector<1x2x128xf32>
    %24 = vector.shape_cast %23 : vector<1x2x128xf32> to vector<2x128xf32>
    %25 = arith.addf %24, %22 : vector<2x128xf32>
    %c0_17 = arith.constant 0 : index
    %c0_18 = arith.constant 0 : index
    %c0_19 = arith.constant 0 : index
    %26 = vector.load %arg7[%c0_17, %c0_18, %c0_19] : memref<1x2x128xf32, #tpu.memory_space<vmem>>, vector<1x2x128xf32>
    %27 = vector.shape_cast %26 : vector<1x2x128xf32> to vector<2x128xf32>
    %28 = vector.shape_cast %25 : vector<2x128xf32> to vector<1x2x128xf32>
    tpu.vector_store %arg7[%c0_17, %c0_18, %c0_19], %28 {strides = array<i32>} : memref<1x2x128xf32, #tpu.memory_space<vmem>>, vector<1x2x128xf32>,
    return
  }
  func.func @transform_0(%arg0: i32, %arg1: i32) -> (i32, i32) {
    %c1_i32 = arith.constant 1 : i32
    %0 = arith.muli %arg0, %c1_i32 : i32
    %1 = arith.addi %0, %arg1 : i32
    %c0_i32 = arith.constant 0 : i32
    %c0_i32_0 = arith.constant 0 : i32
    return %1, %c0_i32 : i32, i32
  }
  func.func @transform_1(%arg0: i32, %arg1: i32) -> (i32, i32) {
    %c0_i32 = arith.constant 0 : i32
    %c0_i32_0 = arith.constant 0 : i32
    %c0_i32_1 = arith.constant 0 : i32
    return %c0_i32, %c0_i32_0 : i32, i32
  }
  func.func @transform_2(%arg0: i32, %arg1: i32) -> (i32, i32) {
    %c0_i32 = arith.constant 0 : i32
    %c0_i32_0 = arith.constant 0 : i32
    %c0_i32_1 = arith.constant 0 : i32
    return %c0_i32, %c0_i32_0 : i32, i32
  }
  func.func @transform_3(%arg0: i32, %arg1: i32) -> (i32, i32) {
    %c0_i32 = arith.constant 0 : i32
    %c0_i32_0 = arith.constant 0 : i32
    %c0_i32_1 = arith.constant 0 : i32
    return %c0_i32, %c0_i32_0 : i32, i32
  }
  func.func @transform_4(%arg0: i32, %arg1: i32) -> (i32, i32) {
    %c1_i32 = arith.constant 1 : i32
    %0 = arith.muli %arg0, %c1_i32 : i32
    %1 = arith.addi %0, %arg1 : i32
    %c0_i32 = arith.constant 0 : i32
    %c0_i32_0 = arith.constant 0 : i32
    return %c0_i32, %1 : i32, i32
  }
  func.func @transform_5(%arg0: i32, %arg1: i32) -> (i32, i32, i32) {
    %c0_i32 = arith.constant 0 : i32
    %c0_i32_0 = arith.constant 0 : i32
    %c0_i32_1 = arith.constant 0 : i32
    return %arg0, %c0_i32, %c0_i32_0 : i32, i32, i32
  }
}

</mosaic_0001>

<bundles_post_ra>
// kernel: tpu_custom_call.1
= control target key start
LH: loop header
LB: loop body
LE: loop exit
PB: predicated region body
PF: predicated region fallthrough
CT: control target
= control target key end

     0   :  { %10 = vsyncpa [#allocation3], 0  ;;  %s792_s0 = inlined_call_operand.hbm [shape: f32[16,128], index: 0, kind: input, shape index: {}]   ;;  %s793_s1 = inlined_call_operand.hbm [shape: f32[128,128], index: 1, kind: input, shape index: {}]   ;;  %s794_s2 = inlined_call_operand.vmem [shape: f32[1,128], index: 2, kind: input, shape index: {}]   ;;  %s795_s3 = inlined_call_operand.hbm [shape: f32[128,128], index: 3, kind: input, shape index: {}]   ;;  %s796_s4 = inlined_call_operand.vmem [shape: f32[2,16], index: 4, kind: input, shape index: {}]   ;;  %s797_s5 = inlined_call_operand.hbm [shape: f32[1,2,128], index: 5, kind: output, shape index: {}]  }
   0x1   :  { %11 = vsyncpa [#allocation6], 0 }
   0x2   :  { %12 = vsyncpa [#allocation4], 0  ;;  %s681_s18 = smov [#allocation5]   ;;  %s682_s20 = smov [#allocation2]  }
   0x3   :  { %s34_s19 = sshll.u32 %s681_s18, 4  ;;  %s22_s21 = sshll.u32 %s682_s20, 4  ;;  %s35_s19 = int_to_ptr.vmem [resolvable:$true] %s34_s19  ;;  %s720_s21 = int_to_ptr.vmem [resolvable:$true] %s22_s21 }
   0x4   :  { %s587_s24 = scalar_lea.hbm %s793_s1, 2048 }
   0x5   :  { %p588_p0 = scmp.ne.s32.totalorder %s793_s1, %s587_s24  ;;  %p591_p1 = scmp.lt.u32.totalorder %s587_s24, %s793_s1 }
   0x7   :  { %p593_p2 = pnand %p591_p1, %p588_p0 }
   0x9   :  { %596 = shalt.err (!%p593_p2)
}
   0xa   :  { %s597_s29 = scalar_lea.vmem %s35_s19, 2048  ;;  %p602_p4 = scmp.lt.s32.totalorder %s35_s19, %s35_s19 }
   0xb   :  { %p598_p3 = scmp.ne.s32.totalorder %s35_s19, %s597_s29  ;;  %p603_p5 = scmp.lt.s32.totalorder %s597_s29, %s597_s29 }
   0xd   :  { %p604_p6 = por %p603_p5, %p602_p4 }
   0xf   :  { %p605_p7 = pnand %p604_p6, %p598_p3 }
  0x11   :  { %608 = shalt.err (!%p605_p7)
}
  0x12   :  { %s683_s30 = smov 128   ;;  %s684_s6 = smov 8  }
  0x13   :  { %40 = dma.hbm_to_vmem [thread:$0]  %s793_s1, 2048, %s35_s19, [#allocation6], %s683_s30, %s683_s30, %s684_s6  }
  0x14   :  { %s609_s11 = scalar_lea.hbm %s792_s0, 256 }
  0x15   :  { %p610_p8 = scmp.ne.s32.totalorder %s792_s0, %s609_s11  ;;  %p613_p9 = scmp.lt.u32.totalorder %s609_s11, %s792_s0 }
  0x17   :  { %p615_p10 = pnand %p613_p9, %p610_p8 }
  0x19   :  { %618 = shalt.err (!%p615_p10)
}
  0x1a   :  { %s619_s16 = scalar_lea.vmem %s720_s21, 256  ;;  %p624_p12 = scmp.lt.s32.totalorder %s720_s21, %s720_s21 }
  0x1b   :  { %p620_p11 = scmp.ne.s32.totalorder %s720_s21, %s619_s16  ;;  %p625_p13 = scmp.lt.s32.totalorder %s619_s16, %s619_s16 }
  0x1d   :  { %p626_p0 = por %p625_p13, %p624_p12 }
  0x1f   :  { %p627_p1 = pnand %p626_p0, %p620_p11 }
  0x21   :  { %630 = shalt.err (!%p627_p1)
}
  0x22   :  { %28 = dma.hbm_to_vmem [thread:$0]  %s792_s0, 256, %s720_s21, [#allocation3], %s683_s30, %s683_s30, %s684_s6  }
  0x23   :  { %s685_s18 = smov [#allocation7]   ;;  %s631_s23 = scalar_lea.hbm %s795_s3, 2048 }
  0x24   :  { %s48_s19 = sshll.u32 %s685_s18, 4  ;;  %p632_p2 = scmp.ne.s32.totalorder %s795_s3, %s631_s23  ;;  %s49_s19 = int_to_ptr.vmem [resolvable:$true] %s48_s19 }
  0x25   :  { %p635_p3 = scmp.lt.u32.totalorder %s631_s23, %s795_s3 }
  0x27   :  { %p637_p4 = pnand %p635_p3, %p632_p2 }
  0x29   :  { %640 = shalt.err (!%p637_p4)
}
  0x2a   :  { %s641_s28 = scalar_lea.vmem %s49_s19, 2048  ;;  %p646_p6 = scmp.lt.s32.totalorder %s49_s19, %s49_s19 }
  0x2b   :  { %p642_p5 = scmp.ne.s32.totalorder %s49_s19, %s641_s28  ;;  %p647_p7 = scmp.lt.s32.totalorder %s641_s28, %s641_s28 }
  0x2d   :  { %p648_p8 = por %p647_p7, %p646_p6 }
  0x2f   :  { %p649_p9 = pnand %p648_p8, %p642_p5 }
  0x31   :  { %652 = shalt.err (!%p649_p9)
}
  0x32   :  { %54 = dma.hbm_to_vmem [thread:$0]  %s795_s3, 2048, %s49_s19, [#allocation6], %s683_s30, %s683_s30, %s684_s6  }
  0x33   :  { %675 = dma.done.wait [#allocation3], 256  }
  0x34   :  { %676 = vsyncadd [#allocation3], 4294967040 }
  0x35   :  { %677 = dma.done.wait [#allocation6], 4096  }
  0x36   :  { %678 = vsyncadd [#allocation6], 4294963200  ;;  %v92_v0 = vld [vmem:[#allocation5] sm:$0xff]  ;;  %v93_v1 = vld [vmem:[#allocation5 + $0x8] sm:$0xff]  ;;  %v686_v39 = vmov 0.0|0.0   ;;  %v687_v40 = vmov 0.0  }
  0x37   :  { %v94_v2 = vld [vmem:[#allocation5 + $0x10] sm:$0xff]  ;;  %v511_v3 = vpack.c.bf16 %v93_v1, %v92_v0  ;;  %v95_v4 = vld [vmem:[#allocation5 + $0x18] sm:$0xff]  ;;  %v96_v6 = vld [vmem:[#allocation5 + $0x20] sm:$0xff]  ;;  %543 = vmatprep.subr.bf16.mxu1 %v686_v39  ;;  %89 = vst [vmem:[#allocation8] sm:$0x3] %v687_v40  ;;  %vm688_vm0 = vmmov 0  }
  0x38   :  { %v515_v5 = vpack.c.bf16 %v95_v4, %v94_v2  ;;  %v97_v7 = vld [vmem:[#allocation5 + $0x28] sm:$0xff]  ;;  %v90_v9 = vld [vmem:[#allocation2] sm:$0xff]  ;;  %v99_v11 = vld [vmem:[#allocation5 + $0x38] sm:$0xff]  ;;  %473 = vmatprep.mubr.msk.f32.mxu1 %vm688_vm0, %v687_v40  ;;  %vm209_vm1 = vcmask 130048  }
  0x39   :  { %512 = vmatprep.subr.bf16.mxu0 %v511_v3  ;;  %v519_v8 = vpack.c.bf16 %v97_v7, %v96_v6  ;;  %v98_v10 = vld [vmem:[#allocation5 + $0x30] sm:$0xff]  ;;  %466 = vmatprep.mubr.f32.mxu0 %v90_v9  ;;  %v100_v13 = vld [vmem:[#allocation5 + $0x40] sm:$0xff]  ;;  %v101_v14 = vld [vmem:[#allocation5 + $0x48] sm:$0xff] }
  0x3a   :  { %514 = vmatpush3.bf16.msra.mxu0 %v511_v3  ;;  %v523_v12 = vpack.c.bf16 %v99_v11, %v98_v10  ;;  %v527_v15 = vpack.c.bf16 %v101_v14, %v100_v13  ;;  %v102_v16 = vld [vmem:[#allocation5 + $0x50] sm:$0xff]  ;;  %v103_v17 = vld [vmem:[#allocation5 + $0x58] sm:$0xff]  ;;  %v104_v19 = vld [vmem:[#allocation5 + $0x60] sm:$0xff] }
  0x3b   :  { %516 = vmatprep.subr.bf16.mxu0 %v515_v5  ;;  %v531_v18 = vpack.c.bf16 %v103_v17, %v102_v16  ;;  %v105_v20 = vld [vmem:[#allocation5 + $0x68] sm:$0xff]  ;;  %v106_v22 = vld [vmem:[#allocation5 + $0x70] sm:$0xff]  ;;  %v107_v23 = vld [vmem:[#allocation5 + $0x78] sm:$0xff] }
  0x3c   :  { %v535_v21 = vpack.c.bf16 %v105_v20, %v104_v19  ;;  %v539_v24 = vpack.c.bf16 %v107_v23, %v106_v22  ;;  %v91_v25 = vld [vmem:[#allocation2 + $0x8] sm:$0xff]  ;;  %v394_v26 = vld [vmem:[%s794_s2] ss:$0 sm:$0xff]  ;;  %v283_v47 = vld [vmem:[#allocation7] sm:$0xff] }
  0x3d   :  { %v284_v48 = vld [vmem:[#allocation7 + $0x8] sm:$0xff]  ;;  %v208_v50 = vld [vmem:[%s796_s4] sm:$0x3]  ;;  %v286_v53 = vld [vmem:[#allocation7 + $0x18] sm:$0xff]  ;;  %s689_s4 = smov [#allocation8]  }
  0x3e   :  { %518 = vmatpush3.bf16.msra.mxu0 %v515_v5  ;;  %v547_v51 = vpack.c.bf16 %v284_v48, %v283_v47  ;;  %v285_v52 = vld [vmem:[#allocation7 + $0x10] sm:$0xff]  ;;  %v287_v55 = vld [vmem:[#allocation7 + $0x20] sm:$0xff]  ;;  %v288_v56 = vld [vmem:[#allocation7 + $0x28] sm:$0xff]  ;;  %s378_s6 = sshll.u32 %s689_s4, 4  ;;  %s379_s6 = int_to_ptr.vmem [resolvable:$true] %s378_s6 }
  0x3f   :  { %520 = vmatprep.subr.bf16.mxu0 %v519_v8  ;;  %v550_v54 = vpack.c.bf16 %v286_v53, %v285_v52  ;;  %v553_v57 = vpack.c.bf16 %v288_v56, %v287_v55  ;;  %v289_v58 = vld [vmem:[#allocation7 + $0x30] sm:$0xff]  ;;  %v290_v59 = vld [vmem:[#allocation7 + $0x38] sm:$0xff]  ;;  %v291_v61 = vld [vmem:[#allocation7 + $0x40] sm:$0xff]  ;;  %s653_s7 = scalar_lea.vmem %s379_s6, 32  ;;  %p658_p11 = scmp.lt.s32.totalorder %s379_s6, %s379_s6 }
  0x40   :  { %v556_v60 = vpack.c.bf16 %v290_v59, %v289_v58  ;;  %v292_v62 = vld [vmem:[#allocation7 + $0x48] sm:$0xff]  ;;  %v293_v0 = vld [vmem:[#allocation7 + $0x50] sm:$0xff]  ;;  %v294_v1 = vld [vmem:[#allocation7 + $0x58] sm:$0xff]  ;;  %p654_p10 = scmp.ne.s32.totalorder %s379_s6, %s653_s7  ;;  %p659_p12 = scmp.lt.s32.totalorder %s653_s7, %s653_s7 }
  0x41   :  { %v559_v63 = vpack.c.bf16 %v292_v62, %v291_v61  ;;  %v562_v2 = vpack.c.bf16 %v294_v1, %v293_v0  ;;  %v295_v3 = vld [vmem:[#allocation7 + $0x60] sm:$0xff]  ;;  %v296_v4 = vld [vmem:[#allocation7 + $0x68] sm:$0xff]  ;;  %v297_v6 = vld [vmem:[#allocation7 + $0x70] sm:$0xff] }
  0x42   :  { %522 = vmatpush3.bf16.msra.mxu0 %v519_v8  ;;  %v565_v5 = vpack.c.bf16 %v296_v4, %v295_v3  ;;  %v298_v7 = vld [vmem:[#allocation7 + $0x78] sm:$0xff]  ;;  %v369_v11 = vld [vmem:[#allocation8] sm:$0x3]  ;;  %p660_p13 = por %p659_p12, %p658_p11 }
  0x43   :  { %524 = vmatprep.subr.bf16.mxu0 %v523_v12  ;;  %v568_v8 = vpack.c.bf16 %v298_v7, %v297_v6 }
  0x44   :  { %p661_p0 = pnand %p660_p13, %p654_p10 }
  0x46   :  { %526 = vmatpush3.bf16.msra.mxu0 %v523_v12 }
  0x47   :  { %528 = vmatprep.subr.bf16.mxu0 %v527_v15 }
  0x4a   :  { %530 = vmatpush3.bf16.msra.mxu0 %v527_v15 }
  0x4b   :  { %532 = vmatprep.subr.bf16.mxu0 %v531_v18 }
  0x4e   :  { %534 = vmatpush3.bf16.msra.mxu0 %v531_v18 }
  0x4f   :  { %536 = vmatprep.subr.bf16.mxu0 %v535_v21 }
  0x52   :  { %538 = vmatpush3.bf16.msra.mxu0 %v535_v21 }
  0x53   :  { %540 = vmatprep.subr.bf16.mxu0 %v539_v24 }
  0x56   :  { %542 = vmatpush3.bf16.msra.mxu0 %v539_v24 }
  0x59   :  { %467 = vmatmul.mubr.f32.vlgmr.msra.gmra.mrb[0].mxu0 %v91_v25 }
 0x12c   :  { %v468_v27 = vpop.f32.mrb[0].mxu0 }
 0x12d   :  { %v181_v28 = vpop.f32.mrb[1].mxu0  ;;  %v187_v30 = vadd.f32 %v468_v27, %v394_v26 }
 0x12e   :  { %v182_v29 = vadd.f32 %v394_v26, %v181_v28 }
 0x130   :  { %190 = vmax.xlane.f32.xlu0 %v182_v29 }
 0x134   :  { %192 = vmax.xlane.f32.xlu0 %v187_v30 }
 0x1bd   :  { %v191_v31 = vpop.xlane.xlu0 %190 }
 0x1be   :  { %v194_v32 = vsub.f32 %v182_v29, %v191_v31 }
 0x1c0   :  { %v196_v33 = vmul.f32 1.442695, %v194_v32 }
 0x1c1   :  { %v193_v34 = vpop.xlane.xlu0 %192 }
 0x1c2   :  { %579 = vpow2.f32 %v196_v33  ;;  %v195_v35 = vsub.f32 %v187_v30, %v193_v34 }
 0x1c4   :  { %v198_v36 = vmul.f32 1.442695, %v195_v35 }
 0x1c6   :  { %581 = vpow2.f32 %v198_v36 }
 0x1cc   :  { %v580_v37 = vpop.eup %579 }
 0x1cd   :  { %200 = vadd.xlane.f32.xlu1 %v580_v37 }
 0x1d0   :  { %v582_v38 = vpop.eup %581 }
 0x1d1   :  { %202 = vadd.xlane.f32.xlu1 %v582_v38 }
 0x25a   :  { %v201_v41 = vpop.xlane.xlu1 %200 }
 0x25b   :  { %583 = vrcp.f32 %v201_v41 }
 0x25e   :  { %v203_v42 = vpop.xlane.xlu1 %202 }
 0x25f   :  { %585 = vrcp.f32 %v203_v42 }
 0x265   :  { %v584_v43 = vpop.eup %583 }
 0x266   :  { %v206_v45 = vmul.f32 %v584_v43, %v580_v37 }
 0x269   :  { %v586_v44 = vpop.eup %585 }
 0x26a   :  { %v207_v46 = vmul.f32 %v586_v44, %v582_v38 }
 0x26c   :  { %v544_v49 = vpack.c.bf16 %v207_v46, %v206_v45 }
 0x26e   :  { %545 = vmatpush3.bf16.msra.mxu1 %v544_v49 }
 0x26f   :  { %546 = vmatprep.subr.bf16.mxu1 %v686_v39 }
 0x271   :  { %474 = vmatmul.mubr.msk.f32.vlgmr.msra.gmra.mrb[0].mxu1 %vm209_vm1, %v208_v50 }
 0x272   :  { %548 = vmatpush3.bf16.msra.mxu1 %v547_v51  ;;  %508 = vmatprep.mubr.msk.f32.mxu1 %vm688_vm0, %v687_v40 }
 0x273   :  { %549 = vmatprep.subr.bf16.mxu1 %v686_v39 }
 0x276   :  { %551 = vmatpush3.bf16.msra.mxu1 %v550_v54 }
 0x277   :  { %552 = vmatprep.subr.bf16.mxu1 %v686_v39 }
 0x27a   :  { %554 = vmatpush3.bf16.msra.mxu1 %v553_v57 }
 0x27b   :  { %555 = vmatprep.subr.bf16.mxu1 %v686_v39 }
 0x27e   :  { %557 = vmatpush3.bf16.msra.mxu1 %v556_v60 }
 0x27f   :  { %558 = vmatprep.subr.bf16.mxu1 %v686_v39 }
 0x282   :  { %560 = vmatpush3.bf16.msra.mxu1 %v559_v63 }
 0x283   :  { %561 = vmatprep.subr.bf16.mxu1 %v686_v39 }
 0x286   :  { %563 = vmatpush3.bf16.msra.mxu1 %v562_v2 }
 0x287   :  { %564 = vmatprep.subr.bf16.mxu1 %v686_v39 }
 0x28a   :  { %566 = vmatpush3.bf16.msra.mxu1 %v565_v5 }
 0x28b   :  { %567 = vmatprep.subr.bf16.mxu1 %v686_v39 }
 0x28e   :  { %569 = vmatpush3.bf16.msra.mxu1 %v568_v8 }
 0x344   :  { %v279_v9 = vpop.f32.mrb[0].mxu1 }
 0x345   :  { %v475_v10 = vpop.f32.mrb[1].mxu1  ;;  %509 = vmatmul.mubr.f32.vlgmr.msra.gmra.mrb[2].mxu1 %v279_v9 }
 0x418   :  { %v365_v12 = vpop.f32.mrb[2].mxu1 }
 0x419   :  { %v370_v13 = vadd.f32 %v369_v11, %v365_v12  ;;  %v510_v14 = vpop.f32.mrb[3].mxu1 }
 0x41b   :  { %371 = vst [vmem:[#allocation8] sm:$0x3] %v370_v13 }
 0x41c   :  { %664 = shalt.err (!%p661_p0)
}
 0x41d   :  { %s665_s10 = scalar_lea.hbm %s797_s5, 32 }
 0x41e   :  { %p666_p1 = scmp.ne.s32.totalorder %s797_s5, %s665_s10  ;;  %p669_p2 = scmp.lt.u32.totalorder %s665_s10, %s797_s5 }
 0x420   :  { %p671_p3 = pnand %p669_p2, %p666_p1 }
 0x422   :  { %674 = shalt.err (!%p671_p3)
}
 0x423   :  { %381 = dma.vmem_to_hbm [thread:$0]  %s379_s6, 32, %s797_s5, [#allocation4]  }
 0x424   :  { %679 = dma.done.wait [#allocation4], 32  }
 0x425   :  { %680 = vsyncadd [#allocation4], 4294967264 }
 0x426   :  { %385 = vsyncpa [#allocation3], 1 }
 0x427   :  { %386 = vsyncpa [#allocation6], 1 }
 0x428   :  { %387 = vsyncpa [#allocation4], 1 }

</bundles_post_ra>
